<compile_context>
chip_gen: v5e
topology: v5e:2x2
jax: 0.10.0
libtpu: 0.0.40
codegen_flags: <defaults>
</compile_context>

<pallas_src>
import functools

import jax
import jax.numpy as jnp
from jax.experimental import pallas as pl
from jax.experimental.pallas import tpu as pltpu

FEATURES = 6
HIDDEN = 100


def _round_up(n, m):
    return ((n + m - 1) // m) * m


def mergenet_kernel(x_ref, w1_ref, b1_ref, w2d_ref, b2d_ref, o_ref, *, chunk):
    # x_ref:   [TILE_B, 6]  f32   (natural layout -> contiguous HBM read)
    # w1_ref:  [100, 6]     bf16  (resident across grid steps)
    # b1_ref:  [100, 1]     f32
    # w2d_ref: [1, 100]     bf16  (w2[1] - w2[0])
    # b2d_ref: [1, 1]       f32   (b2[1] - b2[0])
    # o_ref:   [2, TILE_B]  f32   (row 0 = p0, row 1 = p1; batch on lanes)
    tile_b = o_ref.shape[1]

    w1 = w1_ref[...]
    b1 = b1_ref[...]
    w2d = w2d_ref[...]
    b2d = b2d_ref[...]

    # Static (unrolled) loop over lane sub-chunks of the tile: bounds vreg /
    # VMEM pressure of the hidden activation while the DMA tile stays large.
    for c in range(tile_b // chunk):
        off = c * chunk
        x = x_ref[pl.ds(off, chunk), :]                      # [chunk, 6] f32
        x = jnp.where(x >= 0.0, x, 0.01 * x)                 # leaky_relu (f32 VPU)

        # fc1 + bias + relu:  w1 @ x^T -> [100, chunk] (batch on lanes).
        # NT-form contraction avoids any explicit transpose of x; bf16
        # operands with f32 accumulation avoid the multi-pass f32 MXU path.
        h = jax.lax.dot_general(
            w1, x.astype(jnp.bfloat16),
            dimension_numbers=(((1,), (1,)), ((), ())),
            preferred_element_type=jnp.float32) + b1
        h = jnp.maximum(h, 0.0)

        # fc2 folded to the logit difference: softmax([l0, l1]) == [sigmoid(-d), sigmoid(d)].
        d = jax.lax.dot_general(
            w2d, h.astype(jnp.bfloat16),
            dimension_numbers=(((1,), (0,)), ((), ())),
            preferred_element_type=jnp.float32) + b2d        # [1, chunk]

        p1 = 1.0 / (1.0 + jnp.exp(-d))                       # exp on EUP, f32
        p0 = 1.0 / (1.0 + jnp.exp(d))                        # full precision for small probs
        o_ref[:, pl.ds(off, chunk)] = jnp.concatenate([p0, p1], axis=0)


def mergenet_forward(x, w1, b1, w2, b2, *, tile_b=8192):
    """x: [batch, 6]; params in PyTorch layout (w1 [100,6], b1 [100], w2 [2,100], b2 [2])."""
    batch, feat = x.shape
    assert feat == FEATURES
    assert w1.shape == (HIDDEN, FEATURES) and b1.shape == (HIDDEN,)
    assert w2.shape == (2, HIDDEN) and b2.shape == (2,)

    x = x.astype(jnp.float32)

    # ---- batch tile selection ----
    #  * lane-aligned (multiple of 256 so the in-kernel sub-chunking divides)
    #  * big tiles amortize the ~0.35us per-grid-step overhead
    #  * >=2 grid steps when there is enough work (megacore on v7x)
    b128 = _round_up(batch, 128)
    req = max(256, _round_up(tile_b, 256))
    n_steps = pl.cdiv(b128, req)
    if n_steps < 2 and b128 >= 1024:
        n_steps = 2
    if b128 >= 256:
        tile_b = _round_up(pl.cdiv(b128, n_steps), 256)
    else:
        tile_b = b128                                        # tiny batch: one 128-lane tile
    chunk = 256 if tile_b % 256 == 0 else 128

    b_pad = _round_up(batch, tile_b)
    if b_pad != batch:
        x = jnp.pad(x, ((0, b_pad - batch), (0, 0)))

    # Tiny parameter tensors: bf16 only for the MXU operands, f32 biases.
    w1_bf = w1.astype(jnp.bfloat16)                          # [100, 6]
    b1c = b1.reshape(HIDDEN, 1).astype(jnp.float32)          # [100, 1]
    w2d = (w2[1:2, :] - w2[0:1, :]).astype(jnp.bfloat16)     # [1, 100]
    b2d = (b2[1] - b2[0]).reshape(1, 1).astype(jnp.float32)  # [1, 1]

    grid = (b_pad // tile_b,)

    out_t = pl.pallas_call(
        functools.partial(mergenet_kernel, chunk=chunk),
        out_shape=jax.ShapeDtypeStruct((2, b_pad), jnp.float32),
        grid_spec=pltpu.PrefetchScalarGridSpec(
            num_scalar_prefetch=0,
            grid=grid,
            in_specs=[
                pl.BlockSpec((tile_b, FEATURES), lambda i: (i, 0)),  # x tile (pipelined)
                pl.BlockSpec((HIDDEN, FEATURES), lambda i: (0, 0)),  # weights: resident
                pl.BlockSpec((HIDDEN, 1), lambda i: (0, 0)),
                pl.BlockSpec((1, HIDDEN), lambda i: (0, 0)),
                pl.BlockSpec((1, 1), lambda i: (0, 0)),
            ],
            out_specs=pl.BlockSpec((2, tile_b), lambda i: (0, i)),
        ),
        compiler_params=pltpu.CompilerParams(
            dimension_semantics=("parallel",),          # megacore split on v7x
            vmem_limit_bytes=32 * 1024 * 1024,          # ~10 MiB used; safe on all gens
        ),
    )(x, w1_bf, b1c, w2d, b2d)

    return out_t[:, :batch].T                                # [batch, 2]


def init_params(key):
    # nn.Linear default init (uniform(-1/sqrt(fan_in), 1/sqrt(fan_in))), PyTorch layout.
    k1, k2, k3, k4 = jax.random.split(key, 4)
    bound1 = 1.0 / jnp.sqrt(6.0)
    bound2 = 1.0 / jnp.sqrt(100.0)
    w1 = jax.random.uniform(k1, (HIDDEN, FEATURES), jnp.float32, -bound1, bound1)
    b1 = jax.random.uniform(k2, (HIDDEN,), jnp.float32, -bound1, bound1)
    w2 = jax.random.uniform(k3, (2, HIDDEN), jnp.float32, -bound2, bound2)
    b2 = jax.random.uniform(k4, (2,), jnp.float32, -bound2, bound2)
    return w1, b1, w2, b2


def reference_forward(x, w1, b1, w2, b2):
    x = jnp.where(x >= 0.0, x, 0.01 * x)
    h = jnp.maximum(x @ w1.T + b1, 0.0)
    logits = h @ w2.T + b2
    return jax.nn.softmax(logits, axis=-1)


def _check(batch, kx, params):
    x = jax.random.normal(kx, (batch, FEATURES), jnp.float32)
    out = jax.block_until_ready(mergenet_forward(x, *params))
    ref = reference_forward(x, *params)
    assert out.shape == (batch, 2)
    # bf16 MXU operands (f32 accumulation) -> relaxed tolerance vs the f32 reference.
    assert jnp.allclose(out, ref, atol=5e-3, rtol=5e-3)
    assert jnp.allclose(jnp.sum(out, axis=-1), 1.0, atol=1e-5)


if __name__ == "__main__":
    key = jax.random.PRNGKey(0)
    kx1, kx2, kp = jax.random.split(key, 3)
    params = init_params(kp)

    _check(8, kx1, params)        # small demo shape (single tile, padded 8 -> 128)
    _check(4096, kx2, params)     # exercises the multi-step grid / multi-chunk path

    print("KERNEL_OK")
</pallas_src>

<mosaic_0001>
module attributes {stable_mosaic.version = 11 : i64} {
  func.func @mergenet_kernel(%arg0: i32, %arg1: memref<128x6xf32, #tpu.memory_space<vmem>>, %arg2: memref<100x6xbf16, #tpu.memory_space<vmem>>, %arg3: memref<100x1xf32, #tpu.memory_space<vmem>>, %arg4: memref<1x100xbf16, #tpu.memory_space<vmem>>, %arg5: memref<1x1xf32, #tpu.memory_space<vmem>>, %arg6: memref<2x128xf32, #tpu.memory_space<vmem>>) attributes {dimension_semantics = [#tpu.dimension_semantics<parallel>], iteration_bounds = array<i64: 1>, scalar_prefetch = 0 : i64, scratch_operands = 0 : i64, tpu.core_type = #tpu.core_type<tc>, window_params = [{transform_indices = @transform_0, window_bounds = array<i64: 128, 6>}, {pipeline_mode = #tpu.pipeline_mode<synchronous>, transform_indices = @transform_1, window_bounds = array<i64: 100, 6>}, {pipeline_mode = #tpu.pipeline_mode<synchronous>, transform_indices = @transform_2, window_bounds = array<i64: 100, 1>}, {pipeline_mode = #tpu.pipeline_mode<synchronous>, transform_indices = @transform_3, window_bounds = array<i64: 1, 100>}, {pipeline_mode = #tpu.pipeline_mode<synchronous>, transform_indices = @transform_4, window_bounds = array<i64: 1, 1>}, {transform_indices = @transform_5, window_bounds = array<i64: 2, 128>}]} {
    %c0 = arith.constant 0 : index
    %c0_0 = arith.constant 0 : index
    %0 = vector.load %arg2[%c0, %c0_0] : memref<100x6xbf16, #tpu.memory_space<vmem>>, vector<100x6xbf16>
    %c0_1 = arith.constant 0 : index
    %c0_2 = arith.constant 0 : index
    %1 = vector.load %arg3[%c0_1, %c0_2] : memref<100x1xf32, #tpu.memory_space<vmem>>, vector<100x1xf32>
    %c0_3 = arith.constant 0 : index
    %c0_4 = arith.constant 0 : index
    %2 = vector.load %arg4[%c0_3, %c0_4] : memref<1x100xbf16, #tpu.memory_space<vmem>>, vector<1x100xbf16>
    %c0_5 = arith.constant 0 : index
    %c0_6 = arith.constant 0 : index
    %3 = vector.load %arg5[%c0_5, %c0_6] : memref<1x1xf32, #tpu.memory_space<vmem>>, vector<1x1xf32>
    %c0_7 = arith.constant 0 : index
    %c0_8 = arith.constant 0 : index
    %4 = vector.load %arg1[%c0_7, %c0_8] : memref<128x6xf32, #tpu.memory_space<vmem>>, vector<128x6xf32>
    %cst = arith.constant 0.000000e+00 : f32
    %5 = vector.broadcast %cst : f32 to vector<128x6xf32>
    %6 = arith.cmpf oge, %4, %5 : vector<128x6xf32>
    %cst_9 = arith.constant 0.00999999977 : f32
    %7 = vector.broadcast %cst_9 : f32 to vector<128x6xf32>
    %8 = arith.mulf %7, %4 : vector<128x6xf32>
    %9 = arith.select %6, %4, %8 : vector<128x6xi1>, vector<128x6xf32>
    %10 = arith.truncf %9 : vector<128x6xf32> to vector<128x6xbf16>
    %cst_10 = arith.constant dense<0.000000e+00> : vector<100x128xf32>
    %11 = tpu.matmul %0, %10, %cst_10 {dimension_numbers = #tpu.dot_dimension_numbers<[1], [1], [0], [0], [0, 0, 1, 0], [], []>} : vector<100x6xbf16>, vector<128x6xbf16>, vector<100x128xf32> -> vector<100x128xf32>
    %12 = vector.broadcast %1 : vector<100x1xf32> to vector<100x128xf32>
    %13 = arith.addf %11, %12 : vector<100x128xf32>
    %cst_11 = arith.constant 0.000000e+00 : f32
    %14 = vector.broadcast %cst_11 : f32 to vector<100x128xf32>
    %15 = arith.maximumf %13, %14 : vector<100x128xf32>
    %16 = arith.truncf %15 : vector<100x128xf32> to vector<100x128xbf16>
    %cst_12 = arith.constant dense<0.000000e+00> : vector<1x128xf32>
    %17 = tpu.matmul %2, %16, %cst_12 {dimension_numbers = #tpu.dot_dimension_numbers<[1], [0], [0], [1], [0, 0, 1, 1], [], []>} : vector<1x100xbf16>, vector<100x128xbf16>, vector<1x128xf32> -> vector<1x128xf32>
    %18 = vector.broadcast %3 : vector<1x1xf32> to vector<1x128xf32>
    %19 = arith.addf %17, %18 : vector<1x128xf32>
    %cst_13 = arith.constant 0.000000e+00 : f32
    %20 = vector.broadcast %cst_13 : f32 to vector<1x128xf32>
    %21 = arith.subf %20, %19 : vector<1x128xf32>
    %22 = math.exp %21 : vector<1x128xf32>
    %cst_14 = arith.constant 1.000000e+00 : f32
    %23 = vector.broadcast %cst_14 : f32 to vector<1x128xf32>
    %24 = arith.addf %23, %22 : vector<1x128xf32>
    %cst_15 = arith.constant 1.000000e+00 : f32
    %25 = vector.broadcast %cst_15 : f32 to vector<1x128xf32>
    %26 = arith.divf %25, %24 : vector<1x128xf32>
    %27 = math.exp %19 : vector<1x128xf32>
    %cst_16 = arith.constant 1.000000e+00 : f32
    %28 = vector.broadcast %cst_16 : f32 to vector<1x128xf32>
    %29 = arith.addf %28, %27 : vector<1x128xf32>
    %cst_17 = arith.constant 1.000000e+00 : f32
    %30 = vector.broadcast %cst_17 : f32 to vector<1x128xf32>
    %31 = arith.divf %30, %29 : vector<1x128xf32>
    %32 = tpu.concatenate %31, %26 in 0 : vector<1x128xf32>, vector<1x128xf32> -> vector<2x128xf32>
    %c0_18 = arith.constant 0 : index
    %c0_19 = arith.constant 0 : index
    %33 = vector.load %arg6[%c0_18, %c0_19] : memref<2x128xf32, #tpu.memory_space<vmem>>, vector<2x128xf32>
    tpu.vector_store %arg6[%c0_18, %c0_19], %32 {strides = array<i32>} : memref<2x128xf32, #tpu.memory_space<vmem>>, vector<2x128xf32>,
    return
  }
  func.func @transform_0(%arg0: i32) -> (i32, i32) {
    %c0_i32 = arith.constant 0 : i32
    %c0_i32_0 = arith.constant 0 : i32
    return %arg0, %c0_i32 : i32, i32
  }
  func.func @transform_1(%arg0: i32) -> (i32, i32) {
    %c0_i32 = arith.constant 0 : i32
    %c0_i32_0 = arith.constant 0 : i32
    %c0_i32_1 = arith.constant 0 : i32
    return %c0_i32, %c0_i32_0 : i32, i32
  }
  func.func @transform_2(%arg0: i32) -> (i32, i32) {
    %c0_i32 = arith.constant 0 : i32
    %c0_i32_0 = arith.constant 0 : i32
    %c0_i32_1 = arith.constant 0 : i32
    return %c0_i32, %c0_i32_0 : i32, i32
  }
  func.func @transform_3(%arg0: i32) -> (i32, i32) {
    %c0_i32 = arith.constant 0 : i32
    %c0_i32_0 = arith.constant 0 : i32
    %c0_i32_1 = arith.constant 0 : i32
    return %c0_i32, %c0_i32_0 : i32, i32
  }
  func.func @transform_4(%arg0: i32) -> (i32, i32) {
    %c0_i32 = arith.constant 0 : i32
    %c0_i32_0 = arith.constant 0 : i32
    %c0_i32_1 = arith.constant 0 : i32
    return %c0_i32, %c0_i32_0 : i32, i32
  }
  func.func @transform_5(%arg0: i32) -> (i32, i32) {
    %c0_i32 = arith.constant 0 : i32
    %c0_i32_0 = arith.constant 0 : i32
    return %c0_i32, %arg0 : i32, i32
  }
}

</mosaic_0001>

<bundles_post_ra>
// kernel: tpu_custom_call.1
= control target key start
LH: loop header
LB: loop body
LE: loop exit
PB: predicated region body
PF: predicated region fallthrough
CT: control target
= control target key end

     0   :  { %s688_s0 = inlined_call_operand.vmem [shape: f32[128,6], index: 0, kind: input, shape index: {}]   ;;  %s689_s1 = inlined_call_operand.vmem [shape: bf16[100,6], index: 1, kind: input, shape index: {}]   ;;  %s690_s2 = inlined_call_operand.vmem [shape: f32[100,1], index: 2, kind: input, shape index: {}]   ;;  %s691_s3 = inlined_call_operand.vmem [shape: bf16[1,100], index: 3, kind: input, shape index: {}]   ;;  %s692_s4 = inlined_call_operand.<no memory space> [shape: f32[1,1], index: 4, kind: input, shape index: {}]   ;;  %s693_s5 = inlined_call_operand.hbm [shape: f32[2,128], index: 5, kind: output, shape index: {}]  }
   0x1   :  { %v10_v0 = vstv %s692_s4 }
   0x2   :  { %11 = vst [vmem:[#allocation2] sm:$0x1] %v10_v0 }
   0x3   :  { %v66_v1 = vld [vmem:[%s688_s0 + $0x70] sm:$0xff]  ;;  %v67_v2 = vld [vmem:[%s688_s0 + $0x78] sm:$0xff]  ;;  %v64_v3 = vld [vmem:[%s688_s0 + $0x60] sm:$0xff]  ;;  %vm222_vm2 = vcmask 48128  }
   0x4   :  { %vm82_vm0 = vcmp.ge.f32.partialorder %v66_v1, 0.0  ;;  %vm83_vm1 = vcmp.ge.f32.partialorder %v67_v2, 0.0  ;;  %v98_v4 = vmul.f32 0.01, %v66_v1  ;;  %v99_v5 = vmul.f32 0.01, %v67_v2 }
   0x5   :  { %v65_v6 = vld [vmem:[%s688_s0 + $0x68] sm:$0xff]  ;;  %vm80_vm3 = vcmp.ge.f32.partialorder %v64_v3, 0.0  ;;  %v96_v7 = vmul.f32 0.01, %v64_v3 }
   0x6   :  { %v114_v8 = vsel %vm82_vm0, %v66_v1, %v98_v4  ;;  %v115_v9 = vsel %vm83_vm1, %v67_v2, %v99_v5  ;;  %vm81_vm4 = vcmp.ge.f32.partialorder %v65_v6, 0.0  ;;  %v97_v10 = vmul.f32 0.01, %v65_v6 }
   0x7   :  { %v123_v11 = vpack.c.bf16 %v115_v9, %v114_v8 }
   0x8   :  { %12 = vsyncpa [#allocation4], 0  ;;  %v112_v12 = vsel %vm80_vm3, %v64_v3, %v96_v7  ;;  %v113_v13 = vsel %vm81_vm4, %v65_v6, %v97_v10  ;;  %v62_v15 = vld [vmem:[%s688_s0 + $0x50] sm:$0xff]  ;;  %v63_v16 = vld [vmem:[%s688_s0 + $0x58] sm:$0xff]  ;;  %v518_v36 = vmov 0   ;;  %vm341_vm1 = vcmask 1041408  }
   0x9   :  { %v266_v14 = vsel %vm222_vm2, %v123_v11, 0  ;;  %v122_v17 = vpack.c.bf16 %v113_v13, %v112_v12  ;;  %v94_v18 = vmul.f32 0.01, %v62_v15  ;;  %v95_v19 = vmul.f32 0.01, %v63_v16  ;;  %v60_v23 = vld [vmem:[%s688_s0 + $0x40] sm:$0xff]  ;;  %481 = vset.pattern.permute.xlu0 %v518_v36  ;;  %482 = vset.pattern.permute.xlu1 %v518_v36 }
   0xa   :  { %455 = vmatpush.bf16.xpose.msra.mxu1 %v266_v14  ;;  %456 = vmatpush.bf16.xpose.msra.mxu2 %v266_v14  ;;  %vm78_vm5 = vcmp.ge.f32.partialorder %v62_v15, 0.0  ;;  %vm79_vm6 = vcmp.ge.f32.partialorder %v63_v16, 0.0  ;;  %v61_v24 = vld [vmem:[%s688_s0 + $0x48] sm:$0xff]  ;;  %v92_v26 = vmul.f32 0.01, %v60_v23  ;;  %vm76_vm7 = vcmp.ge.f32.partialorder %v60_v23, 0.0 }
   0xb   :  { %457 = vmatpush.bf16.xpose.msra.mxu3 %v266_v14  ;;  %268 = vmatpush.bf16.xpose.msra.mxu0 %v266_v14  ;;  %v263_v20 = vsel %vm222_vm2, %v122_v17, 0  ;;  %v110_v21 = vsel %vm78_vm5, %v62_v15, %v94_v18  ;;  %v111_v22 = vsel %vm79_vm6, %v63_v16, %v95_v19  ;;  %v93_v27 = vmul.f32 0.01, %v61_v24  ;;  %v58_v31 = vld [vmem:[%s688_s0 + $0x30] sm:$0xff]  ;;  %v59_v32 = vld [vmem:[%s688_s0 + $0x38] sm:$0xff]  ;;  %v56_v40 = vld [vmem:[%s688_s0 + $0x20] sm:$0xff] }
   0xc   :  { %v121_v25 = vpack.c.bf16 %v111_v22, %v110_v21  ;;  %vm77_vm8 = vcmp.ge.f32.partialorder %v61_v24, 0.0  ;;  %v108_v29 = vsel %vm76_vm7, %v60_v23, %v92_v26  ;;  %v90_v34 = vmul.f32 0.01, %v58_v31  ;;  %483 = vset.pattern.permute.xlu2 %v518_v36  ;;  %v57_v41 = vld [vmem:[%s688_s0 + $0x28] sm:$0xff]  ;;  %v49_v43 = vld [vmem:[%s690_s2 + $0x60] sm:$0xf] }
   0xd   :  { %v109_v30 = vsel %vm77_vm8, %v61_v24, %v93_v27  ;;  %v91_v35 = vmul.f32 0.01, %v59_v32  ;;  %vm74_vm9 = vcmp.ge.f32.partialorder %v58_v31, 0.0  ;;  %vm75_vm10 = vcmp.ge.f32.partialorder %v59_v32, 0.0  ;;  %v48_v44 = vld [vmem:[%s690_s2 + $0x58] sm:$0xff]  ;;  %186 = vperm.xlu0 %481, %v49_v43   ;;  %v54_v50 = vld [vmem:[%s688_s0 + $0x10] sm:$0xff] }
   0xe   :  { %v260_v28 = vsel %vm222_vm2, %v121_v25, 0  ;;  %v120_v33 = vpack.c.bf16 %v109_v30, %v108_v29  ;;  %v106_v38 = vsel %vm74_vm9, %v58_v31, %v90_v34  ;;  %v88_v45 = vmul.f32 0.01, %v56_v40  ;;  %181 = vperm.xlu1 %482, %v48_v44   ;;  %v55_v51 = vld [vmem:[%s688_s0 + $0x18] sm:$0xff]  ;;  %v47_v52 = vld [vmem:[%s690_s2 + $0x50] sm:$0xff]  ;;  %v45_v53 = vld [vmem:[%s690_s2 + $0x40] sm:$0xff] }
   0xf   :  { %v107_v39 = vsel %vm75_vm10, %v59_v32, %v91_v35  ;;  %v89_v46 = vmul.f32 0.01, %v57_v41  ;;  %vm72_vm11 = vcmp.ge.f32.partialorder %v56_v40, 0.0  ;;  %vm73_vm12 = vcmp.ge.f32.partialorder %v57_v41, 0.0  ;;  %v52_v60 = vld [vmem:[%s688_s0] sm:$0xff]  ;;  %v53_v61 = vld [vmem:[%s688_s0 + $0x8] sm:$0xff] }
  0x10   :  { %v257_v37 = vsel %vm222_vm2, %v120_v33, 0  ;;  %v119_v42 = vpack.c.bf16 %v107_v39, %v106_v38  ;;  %v104_v48 = vsel %vm72_vm11, %v56_v40, %v88_v45  ;;  %v86_v55 = vmul.f32 0.01, %v54_v50  ;;  %v44_v62 = vld [vmem:[%s690_s2 + $0x38] sm:$0xff]  ;;  %v41_v63 = vld [vmem:[%s690_s2 + $0x20] sm:$0xff]  ;;  %v39_v6 = vld [vmem:[%s690_s2 + $0x10] sm:$0xff] }
  0x11   :  { %v105_v49 = vsel %vm73_vm12, %v57_v41, %v89_v46  ;;  %v87_v56 = vmul.f32 0.01, %v55_v51  ;;  %vm70_vm13 = vcmp.ge.f32.partialorder %v54_v50, 0.0  ;;  %vm71_vm14 = vcmp.ge.f32.partialorder %v55_v51, 0.0  ;;  %v40_v7 = vld [vmem:[%s690_s2 + $0x18] sm:$0xff]  ;;  %v46_v8 = vld [vmem:[%s690_s2 + $0x48] sm:$0xff] }
  0x12   :  { %458 = vmatpush.bf16.xpose.msra.mxu1 %v263_v20  ;;  %459 = vmatpush.bf16.xpose.msra.mxu2 %v263_v20  ;;  %v254_v47 = vsel %vm222_vm2, %v119_v42, 0  ;;  %v118_v54 = vpack.c.bf16 %v105_v49, %v104_v48  ;;  %v102_v58 = vsel %vm70_vm13, %v54_v50, %v86_v55  ;;  %v84_v1 = vmul.f32 0.01, %v52_v60  ;;  %v38_v11 = vld [vmem:[%s690_s2 + $0x8] sm:$0xff]  ;;  %v51_v12 = vld [vmem:[#allocation2] sm:$0x1] }
  0x13   :  { %460 = vmatpush.bf16.xpose.msra.mxu3 %v263_v20  ;;  %269 = vmatpush.bf16.xpose.msra.mxu0 %v263_v20  ;;  %v103_v59 = vsel %vm71_vm14, %v55_v51, %v87_v56  ;;  %v85_v2 = vmul.f32 0.01, %v53_v61  ;;  %vm68_vm15 = vcmp.ge.f32.partialorder %v52_v60, 0.0  ;;  %vm69_vm0 = vcmp.ge.f32.partialorder %v53_v61, 0.0  ;;  %v43_v13 = vld [vmem:[%s690_s2 + $0x30] sm:$0xff]  ;;  %v450_v14 = vld [vmem:[%s689_s1 + $0x8] sm:$0xff] }
  0x14   :  { %v251_v57 = vsel %vm222_vm2, %v118_v54, 0  ;;  %v117_v0 = vpack.c.bf16 %v103_v59, %v102_v58  ;;  %v100_v4 = vsel %vm68_vm15, %v52_v60, %v84_v1  ;;  %171 = vperm.xlu2 %483, %v46_v8   ;;  %v452_v15 = vld [vmem:[%s689_s1 + $0x18] sm:$0xff]  ;;  %v454_v16 = vld [vmem:[%s689_s1 + $0x28] sm:$0xff]  ;;  %v449_v17 = vld [vmem:[%s689_s1] sm:$0xff]  ;;  %s408_s15 = sshll.u32 %s693_s5, 4  ;;  %vm398_vm10 = vcmask 1040384   ;;  %s409_s15 = int_to_ptr.hbm [resolvable:$true] %s408_s15 }
  0x15   :  { %176 = vperm.xlu0 %481, %v47_v52   ;;  %v101_v5 = vsel %vm69_vm0, %v53_v61, %v85_v2  ;;  %v42_v18 = vld [vmem:[%s690_s2 + $0x28] sm:$0xff]  ;;  %v36_v19 = vld [vmem:[%s689_s1 + $0x30] sm:$0x3]  ;;  %v37_v21 = vld [vmem:[%s690_s2] sm:$0xff] }
  0x16   :  { %166 = vperm.xlu1 %482, %v45_v53   ;;  %v248_v3 = vsel %vm222_vm2, %v117_v0, 0  ;;  %v116_v9 = vpack.c.bf16 %v101_v5, %v100_v4  ;;  %v214_v20 = vunpack.c.l.b16 %v36_v19  ;;  %v451_v22 = vld [vmem:[%s689_s1 + $0x10] sm:$0xff]  ;;  %v453_v23 = vld [vmem:[%s689_s1 + $0x20] sm:$0xff] }
  0x18   :  { %v245_v10 = vsel %vm222_vm2, %v116_v9, 0  ;;  %v221_v24 = vpack.c.b16 %v214_v20, %v214_v20 }
  0x1a   :  { %461 = vmatpush.bf16.xpose.msra.mxu1 %v260_v28  ;;  %462 = vmatpush.bf16.xpose.msra.mxu2 %v260_v28 }
  0x1b   :  { %463 = vmatpush.bf16.xpose.msra.mxu3 %v260_v28  ;;  %270 = vmatpush.bf16.xpose.msra.mxu0 %v260_v28 }
  0x1c   :  { %156 = vperm.xlu2 %483, %v43_v13  }
  0x1d   :  { %161 = vperm.xlu0 %481, %v44_v62  }
  0x1e   :  { %146 = vperm.xlu1 %482, %v41_v63  }
  0x22   :  { %464 = vmatpush.bf16.xpose.msra.mxu1 %v257_v37  ;;  %465 = vmatpush.bf16.xpose.msra.mxu2 %v257_v37 }
  0x23   :  { %466 = vmatpush.bf16.xpose.msra.mxu3 %v257_v37  ;;  %271 = vmatpush.bf16.xpose.msra.mxu0 %v257_v37 }
  0x24   :  { %151 = vperm.xlu2 %483, %v42_v18  }
  0x25   :  { %136 = vperm.xlu0 %481, %v39_v6  }
  0x26   :  { %141 = vperm.xlu1 %482, %v40_v7  }
  0x2a   :  { %467 = vmatpush.bf16.xpose.msra.mxu1 %v254_v47  ;;  %468 = vmatpush.bf16.xpose.msra.mxu2 %v254_v47 }
  0x2b   :  { %469 = vmatpush.bf16.xpose.msra.mxu3 %v254_v47  ;;  %272 = vmatpush.bf16.xpose.msra.mxu0 %v254_v47 }
  0x2c   :  { %126 = vperm.xlu2 %483, %v37_v21  }
  0x2d   :  { %131 = vperm.xlu0 %481, %v38_v11  }
  0x2e   :  { %333 = vperm.xlu1 %482, %v51_v12  }
  0x32   :  { %470 = vmatpush.bf16.xpose.msra.mxu1 %v251_v57  ;;  %471 = vmatpush.bf16.xpose.msra.mxu2 %v251_v57 }
  0x33   :  { %472 = vmatpush.bf16.xpose.msra.mxu3 %v251_v57  ;;  %273 = vmatpush.bf16.xpose.msra.mxu0 %v251_v57 }
  0x3a   :  { %473 = vmatpush.bf16.xpose.msra.mxu1 %v248_v3  ;;  %474 = vmatpush.bf16.xpose.msra.mxu2 %v248_v3 }
  0x3b   :  { %475 = vmatpush.bf16.xpose.msra.mxu3 %v248_v3  ;;  %274 = vmatpush.bf16.xpose.msra.mxu0 %v248_v3 }
  0x42   :  { %476 = vmatpush.bf16.xpose.msra.mxu1 %v245_v10  ;;  %477 = vmatpush.bf16.xpose.msra.mxu2 %v245_v10 }
  0x43   :  { %478 = vmatpush.bf16.xpose.msra.mxu3 %v245_v10  ;;  %275 = vmatpush.bf16.xpose.msra.mxu0 %v245_v10 }
  0x49   :  { %442 = vmatmul.msk.bf16.vlgmr.msra.gmra.mxu1 %vm222_vm2, %v450_v14  ;;  %444 = vmatmul.msk.bf16.vlgmr.msra.gmra.mxu2 %vm222_vm2, %v452_v15 }
  0x4a   :  { %446 = vmatmul.msk.bf16.vlgmr.msra.gmra.mxu3 %vm222_vm2, %v454_v16  ;;  %441 = vmatmul.msk.bf16.vlgmr.msra.gmra.mxu0 %vm222_vm2, %v449_v17 }
  0x59   :  { %443 = vmatmul.msk.bf16.gmra.mxu1 %vm222_vm2, %v451_v22  ;;  %445 = vmatmul.msk.bf16.gmra.mxu2 %vm222_vm2, %v453_v23  ;;  %v50_v22 = vld [vmem:[%s691_s3] sm:$0x1]  ;;  %s519_s3 = smov [#allocation3]  }
  0x5a   :  { %447 = vmatmul.msk.bf16.gmra.mxu3 %vm222_vm2, %v221_v24  ;;  %vm337_vm2 = vcmask 818176   ;;  %s406_s12 = sshll.u32 %s519_s3, 4  ;;  %s407_s12 = int_to_ptr.vmem [resolvable:$true] %s406_s12 }
  0x6e   :  { %v172_v30 = vpop.permute.xlu2 %171 }
  0x76   :  { %v157_v36 = vpop.permute.xlu2 %156 }
  0x7e   :  { %v152_v52 = vpop.permute.xlu2 %151 }
  0x7f   :  { %v187_v25 = vpop.permute.xlu0 %186 }
  0x80   :  { %v182_v29 = vpop.permute.xlu1 %181 }
  0x86   :  { %v127_v7 = vpop.permute.xlu2 %126 }
  0x87   :  { %v177_v31 = vpop.permute.xlu0 %176 }
  0x88   :  { %v167_v35 = vpop.permute.xlu1 %166 }
  0x8f   :  { %v162_v37 = vpop.permute.xlu0 %161 }
  0x90   :  { %v147_v48 = vpop.permute.xlu1 %146 }
  0x97   :  { %v137_v55 = vpop.permute.xlu0 %136 }
  0x98   :  { %v142_v4 = vpop.permute.xlu1 %141 }
  0x9f   :  { %v132_v10 = vpop.permute.xlu0 %131 }
  0xa0   :  { %v334_v23 = vpop.permute.xlu1 %333 }
  0xa1   :  { %v336_v24 = vperm.slane %v334_v23, 0 }
  0xc6   :  { %v282_v26 = vpop.f32.mrf.mxu1 }
  0xc7   :  { %v277_v56 = vpop.f32.mrf.mxu0  ;;  %v283_v5 = vadd.f32 %v282_v26, %v137_v55 }
  0xc8   :  { %v278_v13 = vadd.f32 %v277_v56, %v127_v7 }
  0xc9   :  { %v313_v14 = vmax.f32 %v283_v5, 0.0 }
  0xca   :  { %v311_v18 = vmax.f32 %v278_v13, 0.0 }
  0xcc   :  { %v292_v27 = vpop.f32.mrf.mxu2 }
  0xcd   :  { %v302_v28 = vpop.f32.mrf.mxu3  ;;  %v293_v62 = vadd.f32 %v292_v27, %v157_v36 }
  0xce   :  { %v284_v32 = vpop.f32.mrf.mxu1  ;;  %v303_v44 = vadd.f32 %v302_v28, %v177_v31 }
  0xcf   :  { %v317_v2 = vmax.f32 %v293_v62, 0.0  ;;  %v285_v6 = vadd.f32 %v284_v32, %v142_v4  ;;  %v279_v11 = vpop.f32.mrf.mxu0 }
  0xd0   :  { %v321_v51 = vmax.f32 %v303_v44, 0.0  ;;  %v280_v16 = vadd.f32 %v279_v11, %v132_v10 }
  0xd1   :  { %v314_v15 = vmax.f32 %v285_v6, 0.0 }
  0xd2   :  { %v312_v19 = vmax.f32 %v280_v16, 0.0 }
  0xd3   :  { %v325_v20 = vpack.c.bf16 %v314_v15, %v313_v14 }
  0xd4   :  { %v294_v33 = vpop.f32.mrf.mxu2  ;;  %v324_v21 = vpack.c.bf16 %v312_v19, %v311_v18 }
  0xd5   :  { %v304_v34 = vpop.f32.mrf.mxu3  ;;  %v295_v57 = vadd.f32 %v294_v33, %v162_v37 }
  0xd6   :  { %v287_v40 = vpop.f32.mrf.mxu1  ;;  %v305_v42 = vadd.f32 %v304_v34, %v182_v29 }
  0xd7   :  { %v318_v0 = vmax.f32 %v295_v57, 0.0  ;;  %v288_v3 = vadd.f32 %v287_v40, %v147_v48 }
  0xd8   :  { %v322_v46 = vmax.f32 %v305_v42, 0.0 }
  0xd9   :  { %v327_v9 = vpack.c.bf16 %v318_v0, %v317_v2  ;;  %v315_v12 = vmax.f32 %v288_v3, 0.0 }
  0xda   :  { %v329_v60 = vpack.c.bf16 %v322_v46, %v321_v51 }
  0xdc   :  { %v297_v38 = vpop.f32.mrf.mxu2 }
  0xdd   :  { %v307_v39 = vpop.f32.mrf.mxu3  ;;  %v298_v47 = vadd.f32 %v297_v38, %v167_v35 }
  0xde   :  { %v308_v41 = vadd.f32 %v307_v39, %v187_v25  ;;  %v289_v61 = vpop.f32.mrf.mxu1 }
  0xdf   :  { %v319_v58 = vmax.f32 %v298_v47, 0.0  ;;  %v290_v1 = vadd.f32 %v289_v61, %v152_v52 }
  0xe0   :  { %v323_v43 = vmax.f32 %v308_v41, 0.0 }
  0xe1   :  { %v316_v8 = vmax.f32 %v290_v1, 0.0 }
  0xe2   :  { %v330_v45 = vpack.c.bf16 %v323_v43, %v323_v43 }
  0xe3   :  { %v326_v17 = vpack.c.bf16 %v316_v8, %v315_v12 }
  0xe4   :  { %v299_v49 = vpop.f32.mrf.mxu2  ;;  %v343_v50 = vsel %vm341_vm1, %v330_v45, 0 }
  0xe5   :  { %v300_v53 = vadd.f32 %v299_v49, %v172_v30  ;;  %v309_v54 = vpop.f32.mrf.mxu3  ;;  %346 = vmatpush.bf16.msrb.mxu0 %v343_v50 }
  0xe7   :  { %v320_v59 = vmax.f32 %v300_v53, 0.0 }
  0xe9   :  { %347 = vmatpush.bf16.msrb.mxu0 %v329_v60  ;;  %v328_v63 = vpack.c.bf16 %v320_v59, %v319_v58 }
  0xed   :  { %348 = vmatpush.bf16.msrb.mxu0 %v328_v63 }
  0xf1   :  { %349 = vmatpush.bf16.msrb.mxu0 %v327_v9 }
  0xf5   :  { %350 = vmatpush.bf16.msrb.mxu0 %v326_v17 }
  0xf9   :  { %351 = vmatpush.bf16.msrb.mxu0 %v325_v20 }
  0xfd   :  { %352 = vmatpush.bf16.msrb.mxu0 %v324_v21 }
 0x100   :  { %448 = vmatmul.msk.bf16.vlgmr.msrb.gmra.mxu0 %vm337_vm2, %v50_v22 }
 0x17d   :  { %v354_v25 = vpop.f32.mrf.mxu0 }
 0x17e   :  { %v355_v26 = vadd.f32 %v354_v25, %v336_v24 }
 0x180   :  { %v358_v27 = vsub.f32 0.0, %v355_v26  ;;  %v377_v28 = vmul.f32 1.442695, %v355_v26 }
 0x182   :  { %v359_v29 = vmul.f32 1.442695, %v358_v27  ;;  %484 = vpow2.f32 %v377_v28 }
 0x184   :  { %486 = vpow2.f32 %v359_v29 }
 0x185   :  { %v356_v30 = vpop.f32.mrf.mxu0 }
 0x188   :  { %v485_v31 = vpop.eup %484 }
 0x189   :  { %v379_v32 = vadd.f32 1.0, %v485_v31 }
 0x18a   :  { %v487_v33 = vpop.eup %486 }
 0x18b   :  { %v361_v34 = vadd.f32 1.0, %v487_v33  ;;  %488 = vrcp.f32 %v379_v32  ;;  %vm385_vm5 = vweird.f32 %v379_v32  ;;  %v391_v46 = vand.u32 2147483648, %v379_v32 }
 0x18c   :  { %v389_v49 = vand.u32 2147483647, %v379_v32 }
 0x18d   :  { %490 = vrcp.f32 %v361_v34  ;;  %v373_v42 = vand.u32 2147483648, %v361_v34  ;;  %v371_v44 = vand.u32 2147483647, %v361_v34  ;;  %vm367_vm6 = vweird.f32 %v361_v34 }
 0x18e   :  { %v392_v54 = vor.u32 1.1754944e-38, %v391_v46  ;;  %vm390_vm11 = vcmp.eq.f32.partialorder %v389_v49, 8.507059e+37 }
 0x18f   :  { %v374_v50 = vor.u32 1.1754944e-38, %v373_v42  ;;  %vm372_vm9 = vcmp.eq.f32.partialorder %v371_v44, 8.507059e+37 }
 0x191   :  { %v489_v35 = vpop.eup %488 }
 0x192   :  { %v381_v36 = vmul.f32 %v489_v35, %v379_v32  ;;  %vm386_vm3 = vweird.f32 %v489_v35 }
 0x193   :  { %v491_v37 = vpop.eup %490  ;;  %vm679_vm7 = vmor %vm385_vm5, %vm386_vm3 }
 0x194   :  { %v363_v38 = vmul.f32 %v491_v37, %v361_v34  ;;  %v382_v39 = vsub.f32 1.0, %v381_v36  ;;  %vm368_vm4 = vweird.f32 %v491_v37 }
 0x195   :  { %vm369_vm8 = vmor %vm367_vm6, %vm368_vm4 }
 0x196   :  { %v364_v40 = vsub.f32 1.0, %v363_v38  ;;  %v383_v41 = vmul.f32 %v489_v35, %v382_v39 }
 0x198   :  { %v365_v43 = vmul.f32 %v491_v37, %v364_v40  ;;  %v384_v45 = vadd.f32 %v489_v35, %v383_v41 }
 0x19a   :  { %v366_v47 = vadd.f32 %v491_v37, %v365_v43  ;;  %v388_v52 = vsel %vm679_vm7, %v489_v35, %v384_v45 }
 0x19b   :  { %v393_v56 = vsel %vm390_vm11, %v392_v54, %v388_v52 }
 0x19c   :  { %v370_v51 = vsel %vm369_vm8, %v491_v37, %v366_v47 }
 0x19d   :  { %v375_v53 = vsel %vm372_vm9, %v374_v50, %v370_v51 }
 0x19e   :  { %v396_v55 = vrot.slane %v375_v53, 7 }
 0x1a0   :  { %v399_v57 = vsel %vm398_vm10, %v393_v56, %v396_v55 }
 0x1a1   :  { %400 = vst [vmem:[#allocation3] sm:$0x3] %v399_v57 }
 0x1a2   :  { %411 = dma.vmem_to_hbm [thread:$0]  %s407_s12, 32, %s409_s15, [#allocation4]  }
 0x1a3   :  { %516 = dma.done.wait [#allocation4], 32  }
 0x1a4   :  { %517 = vsyncadd [#allocation4], 4294967264 }
 0x1a5   :  { %416 = vsyncpa [#allocation4], 1 }

</bundles_post_ra>
